<compile_context>
chip_gen: v7x
topology: tpu7x:2x2x1
jax: 0.10.0
libtpu: 0.0.40
codegen_flags: <defaults>
</compile_context>

<pallas_src>
import functools
import math

import jax
import jax.numpy as jnp
from jax.experimental import pallas as pl
from jax.experimental.pallas import tpu as pltpu


def _capslen_kernel(x_ref, sel_ref, o_ref, *, eps):
    # x_ref:   (tile_r, 128) block, natural contiguous layout, lane-dense.
    # sel_ref: (128, G) static selector; column g is 1 on the D lanes of
    #          capsule g within a 128-lane row.
    # o_ref:   (tile_r, G) block -- one length per capsule.
    x = x_ref[...].astype(jnp.float32)
    sq = x * x                                              # VPU
    ss = jnp.dot(sq, sel_ref[...],                          # grouped lane reduce on MXU
                 preferred_element_type=jnp.float32)        # (tile_r, G)
    o_ref[...] = jnp.sqrt(ss + eps).astype(o_ref.dtype)


def _round_up(x, m):
    return (x + m - 1) // m * m


def caps_len(x, eps=1e-07, target_block_bytes=8 * 1024 * 1024):
    """Capsule lengths: sqrt(sum(x^2, axis=-1) + eps), any leading dims."""
    D = x.shape[-1]
    lead = x.shape[:-1]
    M = math.prod(lead)

    if D > 128:
        # TODO(synk): capsules wider than one 128-lane row span multiple rows;
        # not worth a dedicated kernel path here -- plain XLA fallback.
        return jnp.sqrt(
            jnp.sum(x.astype(jnp.float32) ** 2, axis=-1) + eps
        ).astype(x.dtype)

    # Pad the capsule dim up to a power-of-two divisor of 128.  Zeros do not
    # change the sum of squares.  No-op (no copy) for D = 8/16/32/64/128.
    d_pad = max(1, 1 << (D - 1).bit_length()) if D > 1 else 1
    if d_pad != D:
        x = jnp.pad(x, [(0, 0)] * len(lead) + [(0, d_pad - D)])

    G = 128 // d_pad                    # capsules per 128-lane row
    m_pad = _round_up(M, G)
    flat = x.reshape(-1)                # free (contiguous reinterpret)
    if m_pad != M:
        # Rare: only when the capsule count is not lane-group aligned.
        flat = jnp.pad(flat, (0, (m_pad - M) * d_pad))
    R = (m_pad * d_pad) // 128
    x2 = flat.reshape(R, 128)           # free (contiguous reinterpret)

    # Static lane -> capsule selector (128, G).
    sel = (
        jnp.arange(128, dtype=jnp.int32)[:, None] // d_pad
        == jnp.arange(G, dtype=jnp.int32)[None, :]
    ).astype(jnp.float32)

    # Tile sizing: ~8 MiB of input per grid step (double-buffered 16 MiB fits
    # every generation's scoped VMEM, incl. v7x's 64 MiB total); for large
    # inputs use >= 2 blocks so the "parallel" axis shards across v7x's two
    # TensorCores; for small inputs one block minimizes per-step overhead.
    itemsize = jnp.dtype(x.dtype).itemsize
    rows_cap = max(8, (target_block_bytes // (128 * itemsize)) // 8 * 8)
    if R <= 512:
        tile_r = R                      # single block (block dim == full dim is legal)
    else:
        tile_r = min(rows_cap, _round_up(pl.cdiv(R, 2), 8))
    grid_r = pl.cdiv(R, tile_r)         # ragged last block handled by Pallas

    kernel = functools.partial(_capslen_kernel, eps=eps)
    out = pl.pallas_call(
        kernel,
        out_shape=jax.ShapeDtypeStruct((R, G), x.dtype),
        grid=(grid_r,),
        in_specs=[
            pl.BlockSpec((tile_r, 128), lambda i: (i, 0)),
            # Constant block index: the pipeline does not re-fetch it per step.
            pl.BlockSpec((128, G), lambda i: (0, 0)),
        ],
        out_specs=pl.BlockSpec((tile_r, G), lambda i: (i, 0)),
        compiler_params=pltpu.CompilerParams(
            dimension_semantics=("parallel",),      # megacore sharding on v7x
            vmem_limit_bytes=32 * 1024 * 1024,      # >= 2x 8 MiB blocks + slack
        ),
    )(x2, sel)

    # (R, G) row-major is exactly capsule order -> free reshape back.
    return out.reshape(m_pad)[:M].reshape(lead)


def caps_len_ref(x, eps=1e-07):
    return jnp.sqrt(jnp.sum(x.astype(jnp.float32) ** 2, axis=-1) + eps).astype(x.dtype)


if __name__ == "__main__":
    key = jax.random.PRNGKey(0)
    k1, k2, k3, k4 = jax.random.split(key, 4)

    # Shipped capsule-layer-like shape: batch=2, 16 capsules, 8-dim capsules.
    x_small = jax.random.normal(k1, (2, 16, 8), dtype=jnp.float32)
    out_small = jax.block_until_ready(caps_len(x_small))
    assert out_small.shape == (2, 16), out_small.shape
    assert jnp.allclose(out_small, caps_len_ref(x_small), atol=1e-5, rtol=1e-5)

    # D=16 capsules, single-block path, no padding (M=1200 divisible by G=8).
    x_mid = jax.random.normal(k2, (4, 300, 16), dtype=jnp.float32)
    out_mid = jax.block_until_ready(caps_len(x_mid))
    assert out_mid.shape == (4, 300), out_mid.shape
    assert jnp.allclose(out_mid, caps_len_ref(x_mid), atol=1e-5, rtol=1e-5)

    # Non-lane-group-aligned capsule count (M=150, G=16) -> structural pad path.
    x_ragged = jax.random.normal(k3, (3, 50, 8), dtype=jnp.float32)
    out_ragged = jax.block_until_ready(caps_len(x_ragged))
    assert out_ragged.shape == (3, 50), out_ragged.shape
    assert jnp.allclose(out_ragged, caps_len_ref(x_ragged), atol=1e-5, rtol=1e-5)

    # Larger input to exercise the multi-block ("parallel") grid path (grid >= 2).
    x_big = jax.random.normal(k4, (4, 4096, 8), dtype=jnp.float32)
    out_big = jax.block_until_ready(caps_len(x_big))
    assert out_big.shape == (4, 4096), out_big.shape
    assert jnp.allclose(out_big, caps_len_ref(x_big), atol=1e-5, rtol=1e-5)

    print("KERNEL_OK")
</pallas_src>

<mosaic_0001>
module attributes {stable_mosaic.version = 11 : i64} {
  func.func @_capslen_kernel(%arg0: i32, %arg1: memref<2x128xf32, #tpu.memory_space<vmem>>, %arg2: memref<128x16xf32, #tpu.memory_space<vmem>>, %arg3: memref<2x16xf32, #tpu.memory_space<vmem>>) attributes {dimension_semantics = [#tpu.dimension_semantics<parallel>], iteration_bounds = array<i64: 1>, scalar_prefetch = 0 : i64, scratch_operands = 0 : i64, tpu.core_type = #tpu.core_type<tc>, window_params = [{transform_indices = @transform_0, window_bounds = array<i64: 2, 128>}, {pipeline_mode = #tpu.pipeline_mode<synchronous>, transform_indices = @transform_1, window_bounds = array<i64: 128, 16>}, {transform_indices = @transform_2, window_bounds = array<i64: 2, 16>}]} {
    %c0 = arith.constant 0 : index
    %c0_0 = arith.constant 0 : index
    %0 = vector.load %arg1[%c0, %c0_0] : memref<2x128xf32, #tpu.memory_space<vmem>>, vector<2x128xf32>
    %1 = arith.mulf %0, %0 : vector<2x128xf32>
    %c0_1 = arith.constant 0 : index
    %c0_2 = arith.constant 0 : index
    %2 = vector.load %arg2[%c0_1, %c0_2] : memref<128x16xf32, #tpu.memory_space<vmem>>, vector<128x16xf32>
    %cst = arith.constant dense<0.000000e+00> : vector<2x16xf32>
    %3 = tpu.matmul %1, %2, %cst {dimension_numbers = #tpu.dot_dimension_numbers<[1], [0], [0], [1], [0, 0, 1, 1], [], []>} : vector<2x128xf32>, vector<128x16xf32>, vector<2x16xf32> -> vector<2x16xf32>
    %cst_3 = arith.constant 1.000000e-07 : f32
    %4 = vector.broadcast %cst_3 : f32 to vector<2x16xf32>
    %5 = arith.addf %3, %4 : vector<2x16xf32>
    %6 = math.sqrt %5 : vector<2x16xf32>
    %c0_4 = arith.constant 0 : index
    %c0_5 = arith.constant 0 : index
    %7 = vector.load %arg3[%c0_4, %c0_5] : memref<2x16xf32, #tpu.memory_space<vmem>>, vector<2x16xf32>
    tpu.vector_store %arg3[%c0_4, %c0_5], %6 {strides = array<i32>} : memref<2x16xf32, #tpu.memory_space<vmem>>, vector<2x16xf32>,
    return
  }
  func.func @transform_0(%arg0: i32) -> (i32, i32) {
    %c0_i32 = arith.constant 0 : i32
    %c0_i32_0 = arith.constant 0 : i32
    return %arg0, %c0_i32 : i32, i32
  }
  func.func @transform_1(%arg0: i32) -> (i32, i32) {
    %c0_i32 = arith.constant 0 : i32
    %c0_i32_0 = arith.constant 0 : i32
    %c0_i32_1 = arith.constant 0 : i32
    return %c0_i32, %c0_i32_0 : i32, i32
  }
  func.func @transform_2(%arg0: i32) -> (i32, i32) {
    %c0_i32 = arith.constant 0 : i32
    %c0_i32_0 = arith.constant 0 : i32
    return %arg0, %c0_i32 : i32, i32
  }
}

</mosaic_0001>

<bundles_post_ra>
// kernel: tpu_custom_call.1
= control target key start
LH: loop header
LB: loop body
LE: loop exit
PB: predicated region body
PF: predicated region fallthrough
CT: control target
= control target key end

     0   :  { %v229_v3 = vmov 0.0|0.0   ;;  %vm230_vm0 = vmmov 0   ;;  %v231_v6 = vmov 0.0   ;;  %s311_s0 = inlined_call_operand.vmem [shape: f32[2,128], index: 0, kind: input, shape index: {}]   ;;  %s312_s1 = inlined_call_operand.vmem [shape: f32[128,16], index: 1, kind: input, shape index: {}]   ;;  %s313_s2 = inlined_call_operand.hbm [shape: f32[2,16], index: 2, kind: output, shape index: {}]  }
   0x1   :  { %v14_v0 = vld [vmem:[%s312_s1] sm:$0xff]  ;;  %v15_v1 = vld [vmem:[%s312_s1 + $0x8] sm:$0xff]  ;;  %v16_v2 = vld [vmem:[%s312_s1 + $0x10] sm:$0xff]  ;;  %175 = vmatprep.subr.bf16.mxu0 %v229_v3  ;;  %172 = vmatprep.mubr.msk.f32.mxu0 %vm230_vm0, %v231_v6 }
   0x2   :  { %v176_v4 = vpack.c.bf16 %v15_v1, %v14_v0  ;;  %v17_v5 = vld [vmem:[%s312_s1 + $0x18] sm:$0xff]  ;;  %v18_v8 = vld [vmem:[%s312_s1 + $0x20] sm:$0xff]  ;;  %v19_v9 = vld [vmem:[%s312_s1 + $0x28] sm:$0xff] }
   0x3   :  { %v179_v7 = vpack.c.bf16 %v17_v5, %v16_v2 }
   0x4   :  { %177 = vmatpush3.bf16.msra.mxu0 %v176_v4 }
   0x5   :  { %178 = vmatprep.subr.bf16.mxu0 %v229_v3 }
   0x6   :  { %7 = vsyncpa [#allocation3], 0  ;;  %v182_v10 = vpack.c.bf16 %v19_v9, %v18_v8  ;;  %v20_v11 = vld [vmem:[%s312_s1 + $0x30] sm:$0xff]  ;;  %v21_v12 = vld [vmem:[%s312_s1 + $0x38] sm:$0xff]  ;;  %s232_s15 = smov [#allocation2]   ;;  %vm107_vm2 = vcmask 123904  }
   0x7   :  { %v185_v13 = vpack.c.bf16 %v21_v12, %v20_v11  ;;  %v22_v14 = vld [vmem:[%s312_s1 + $0x40] sm:$0xff]  ;;  %v23_v15 = vld [vmem:[%s312_s1 + $0x48] sm:$0xff]  ;;  %v24_v17 = vld [vmem:[%s312_s1 + $0x50] sm:$0xff]  ;;  %s115_s16 = sshll.u32 %s232_s15, 4  ;;  %s116_s16 = int_to_ptr.vmem [resolvable:$true] %s115_s16 }
   0x8   :  { %180 = vmatpush3.bf16.msra.mxu0 %v179_v7  ;;  %v188_v16 = vpack.c.bf16 %v23_v15, %v22_v14  ;;  %v25_v18 = vld [vmem:[%s312_s1 + $0x58] sm:$0xff]  ;;  %v26_v20 = vld [vmem:[%s312_s1 + $0x60] sm:$0xff]  ;;  %v27_v21 = vld [vmem:[%s312_s1 + $0x68] sm:$0xff]  ;;  %p210_p1 = scmp.lt.s32.totalorder %s116_s16, %s116_s16 }
   0x9   :  { %181 = vmatprep.subr.bf16.mxu0 %v229_v3  ;;  %v191_v19 = vpack.c.bf16 %v25_v18, %v24_v17  ;;  %v194_v22 = vpack.c.bf16 %v27_v21, %v26_v20  ;;  %v28_v23 = vld [vmem:[%s312_s1 + $0x70] sm:$0xff]  ;;  %v29_v24 = vld [vmem:[%s312_s1 + $0x78] sm:$0xff]  ;;  %v12_v26 = vld [vmem:[%s311_s0] sm:$0x3]  ;;  %s205_s0 = scalar_lea.vmem %s116_s16, 32 }
   0xa   :  { %v197_v25 = vpack.c.bf16 %v29_v24, %v28_v23  ;;  %v13_v27 = vmul.f32 %v12_v26, %v12_v26  ;;  %p206_p0 = scmp.ne.s32.totalorder %s116_s16, %s205_s0  ;;  %p211_p2 = scmp.lt.s32.totalorder %s205_s0, %s205_s0 }
   0xc   :  { %183 = vmatpush3.bf16.msra.mxu0 %v182_v10  ;;  %p212_p3 = por %p211_p2, %p210_p1 }
   0xd   :  { %184 = vmatprep.subr.bf16.mxu0 %v229_v3 }
   0xe   :  { %p213_p4 = pnand %p212_p3, %p206_p0 }
  0x10   :  { %186 = vmatpush3.bf16.msra.mxu0 %v185_v13 }
  0x11   :  { %187 = vmatprep.subr.bf16.mxu0 %v229_v3 }
  0x14   :  { %189 = vmatpush3.bf16.msra.mxu0 %v188_v16 }
  0x15   :  { %190 = vmatprep.subr.bf16.mxu0 %v229_v3 }
  0x18   :  { %192 = vmatpush3.bf16.msra.mxu0 %v191_v19 }
  0x19   :  { %193 = vmatprep.subr.bf16.mxu0 %v229_v3 }
  0x1c   :  { %195 = vmatpush3.bf16.msra.mxu0 %v194_v22 }
  0x1d   :  { %196 = vmatprep.subr.bf16.mxu0 %v229_v3 }
  0x20   :  { %198 = vmatpush3.bf16.msra.mxu0 %v197_v25 }
  0x23   :  { %173 = vmatmul.mubr.f32.vlgmr.msra.gmra.mrb[0].mxu0 %v13_v27 }
  0xf6   :  { %v96_v28 = vpop.f32.mrb[0].mxu0 }
  0xf7   :  { %v97_v29 = vadd.f32 1e-07, %v96_v28  ;;  %v174_v30 = vpop.f32.mrb[1].mxu0 }
  0xf9   :  { %203 = vrsqrt.f32 %v97_v29  ;;  %vm102_vm1 = vcmp.eq.f32.partialorder %v97_v29, inf  ;;  %v105_v33 = vand.u32 2147483648, %v97_v29  ;;  %vm104_vm3 = vcmp.eq.f32.partialorder %v97_v29, 0.0 }
 0x103   :  { %v204_v31 = vpop.eup %203 }
 0x104   :  { %v101_v32 = vmul.f32 %v204_v31, %v97_v29 }
 0x106   :  { %v103_v34 = vsel %vm102_vm1, %v97_v29, %v101_v32 }
 0x107   :  { %v106_v35 = vsel %vm104_vm3, %v105_v33, %v103_v34 }
 0x108   :  { %108 = vst.msk [vmem:[#allocation2] sm:$0x3] %vm107_vm2, %v106_v35 }
 0x109   :  { %216 = shalt.err (!%p213_p4)
}
 0x10a   :  { %s217_s18 = scalar_lea.hbm %s313_s2, 32 }
 0x10b   :  { %p218_p5 = scmp.ne.s32.totalorder %s313_s2, %s217_s18  ;;  %p221_p6 = scmp.lt.u32.totalorder %s217_s18, %s313_s2 }
 0x10d   :  { %p223_p7 = pnand %p221_p6, %p218_p5 }
 0x10f   :  { %226 = shalt.err (!%p223_p7)
}
 0x110   :  { %118 = dma.vmem_to_hbm [thread:$0]  %s116_s16, 32, %s313_s2, [#allocation3]  }
 0x111   :  { %227 = dma.done.wait [#allocation3], 32  }
 0x112   :  { %228 = vsyncadd [#allocation3], 4294967264 }
 0x113   :  { %122 = vsyncpa [#allocation3], 1 }

</bundles_post_ra>
